<compile_context>
chip_gen: v5e
topology: v5e:2x2
jax: 0.10.0
libtpu: 0.0.40
codegen_flags: <defaults>
</compile_context>

<pallas_src>
import math

import jax
import jax.numpy as jnp
import numpy as np
from jax.experimental import pallas as pl
from jax.experimental.pallas import tpu as pltpu

# ----------------------------- config ---------------------------------------
B = 2             # N_imgs
NUM_OPTIONS = 4   # captions per image
N = B * NUM_OPTIONS   # N_caps = 8
D = 32            # feature dim
L = 4             # number of feature layers in level_h_list
H = 32            # NegationDetector hidden dim
assert H == D, "param packing below assumes H == D"

TILE_N = N        # caption tile per grid step (whole set at these small sizes)

NEG_THR = 0.5         # cfg['NegationDetector']['neg_thr']
# sigmoid(x) > NEG_THR  <=>  x > logit(NEG_THR)  (precomputed on host; 0.0 here)
NEG_LOGIT_THR = float(math.log(NEG_THR / (1.0 - NEG_THR)))
LOGIT_SCALE = 100.0   # CLIP-style inverse temperature
NEG_WEIGHT = 1.0      # weight of the negated-object penalty in the Frame

# packed-parameter row layout (single [P_ROWS, D] f32 buffer)
_ROW_W1 = 0              # rows [0, D)        : w1  [D, H]
_ROW_WP = D              # rows [D, 2D)       : wp  [D, D]
_ROW_B1 = 2 * D          # row 2D             : b1  [H]
_ROW_W2 = 2 * D + 1      # row 2D+1           : w2  [H]   (column squeezed to a row)
_ROW_WA = 2 * D + 2      # row 2D+2           : wa  [D]   (column squeezed to a row)
_ROW_BP = 2 * D + 3      # row 2D+3           : bp  [D]
_ROW_B2 = 2 * D + 4      # row 2D+4, col 0    : b2  scalar
P_ROWS = 2 * D + 8       # padded to a sublane multiple


# ----------------------------- kernel ---------------------------------------
def glasses_kernel(i_ref, h_ref, lvl_ref, p_ref, t2i_ref, i2t_ref):
    """Full Glasses forward hot path in VMEM.

    i_ref  : [B, D]          image features
    h_ref  : [TILE_N, D]     last-layer caption features
    lvl_ref: [L, TILE_N, D]  per-layer caption features (layer-major)
    p_ref  : [P_ROWS, D]     packed parameters (see row layout above)
    t2i_ref: [TILE_N, B]     scores_T2I tile
    i2t_ref: [B, TILE_N]     scores_I2T tile (transpose folded into the kernel)
    """
    h = h_ref[...]                                   # [Nt, D]
    lvl = lvl_ref[...]                               # [L, Nt, D]

    w1 = p_ref[_ROW_W1:_ROW_W1 + D, :]               # [D, H]
    wp = p_ref[_ROW_WP:_ROW_WP + D, :]               # [D, D]
    b1 = p_ref[_ROW_B1:_ROW_B1 + 1, :]               # [1, H]
    w2 = p_ref[_ROW_W2:_ROW_W2 + 1, :]               # [1, H]
    wa = p_ref[_ROW_WA:_ROW_WA + 1, :]               # [1, D]
    bp = p_ref[_ROW_BP:_ROW_BP + 1, :]               # [1, D]
    b2 = p_ref[_ROW_B2:_ROW_B2 + 1, 0:1]             # [1, 1]

    # --- NegationDetector (frozen MLP; sigmoid folded into threshold) -------
    hid = jnp.dot(h, w1, preferred_element_type=jnp.float32) + b1        # [Nt, H] (MXU)
    hid = jnp.maximum(hid, 0.0)
    # lane-width-1 projection -> VPU multiply + lane reduce, not a 1-wide matmul
    neg_logit = jnp.sum(hid * w2, axis=-1, keepdims=True) + b2           # [Nt, 1]
    neg_mask = neg_logit > NEG_LOGIT_THR                                 # [Nt, 1] bool

    # --- CLIPGlassesLens: softmax attention over the leading L axis ---------
    # layer-major layout: each slab lvl[l] is a sublane-full (Nt, D) tile and
    # all L-axis reductions unroll to VPU adds across slabs (no XLU traffic).
    logits = jnp.sum(lvl * wa, axis=-1, keepdims=True)                   # [L, Nt, 1]
    m = jnp.max(logits, axis=0, keepdims=True)                           # [1, Nt, 1]
    e = jnp.exp(logits - m)                                              # [L, Nt, 1]
    denom = jnp.sum(e, axis=0)                                           # [Nt, 1]
    # normalize the pooled vector, not alpha (N*D reciprocal-multiplies, not N*L*D)
    pooled = jnp.sum(e * lvl, axis=0) * pl.reciprocal(denom, approx=False)  # [Nt, D]
    h_neg = jnp.dot(pooled, wp, preferred_element_type=jnp.float32) + bp    # [Nt, D] (MXU)

    # --- CLIPGlassesFrame: cosine sims + negation penalty -------------------
    def l2norm(x):
        return x * jax.lax.rsqrt(jnp.sum(x * x, axis=-1, keepdims=True) + 1e-12)

    i_n = l2norm(i_ref[...])                                             # [B, D]
    h_n = l2norm(h)                                                      # [Nt, D]
    hn_n = l2norm(h_neg)                                                 # [Nt, D]

    # Fold mask + penalty weight into one combined text vector:
    #   g = h_n - NEG_WEIGHT * (neg_mask ? h_neg_n : 0)
    # so scores[n,b] = LOGIT_SCALE * <g[n], i_n[b]> and the I2T orientation is
    # the same contraction with swapped broadcast -- no concat, no transpose,
    # no end-of-chain MXU push/pop at these tiny shapes.
    g = h_n - jnp.where(neg_mask, NEG_WEIGHT * hn_n, 0.0)                # [Nt, D]

    t2i_ref[...] = LOGIT_SCALE * jnp.sum(g[:, None, :] * i_n[None, :, :], axis=-1)
    i2t_ref[...] = LOGIT_SCALE * jnp.sum(i_n[:, None, :] * g[None, :, :], axis=-1)


# ----------------------------- wrapper ---------------------------------------
def pack_params(params):
    """Pack all small parameter tensors into one [P_ROWS, D] buffer.

    Done once, outside jit (params are static across calls in the real model).
    """
    rows = [
        params["w1"].astype(jnp.float32),                                # [D, H]
        params["wp"].astype(jnp.float32),                                # [D, D]
        params["b1"].reshape(1, H).astype(jnp.float32),
        params["w2"].reshape(1, H).astype(jnp.float32),
        params["wa"].reshape(1, D).astype(jnp.float32),
        params["bp"].reshape(1, D).astype(jnp.float32),
        jnp.broadcast_to(params["b2"].reshape(1, 1), (1, D)).astype(jnp.float32),
        jnp.zeros((P_ROWS - (2 * D + 5), D), jnp.float32),               # pad
    ]
    return jnp.concatenate(rows, axis=0)


@jax.jit
def glasses_forward(I, h, level_h_list, packed_params):
    """I: [B, D], h: [N, D], level_h_list: [L, N, D] (layer-major).

    Returns (scores_T2I [N, B], scores_I2T [B, N]) -- both produced in-kernel.
    """
    n_caps = h.shape[0]
    n_imgs = I.shape[0]
    assert n_caps % TILE_N == 0
    grid = (n_caps // TILE_N,)

    scores_T2I, scores_I2T = pl.pallas_call(
        glasses_kernel,
        out_shape=(
            jax.ShapeDtypeStruct((n_caps, n_imgs), jnp.float32),
            jax.ShapeDtypeStruct((n_imgs, n_caps), jnp.float32),
        ),
        grid_spec=pltpu.PrefetchScalarGridSpec(
            num_scalar_prefetch=0,
            grid=grid,
            in_specs=[
                pl.BlockSpec((n_imgs, D), lambda i: (0, 0)),         # I (shared)
                pl.BlockSpec((TILE_N, D), lambda i: (i, 0)),         # h tile
                pl.BlockSpec((L, TILE_N, D), lambda i: (0, i, 0)),   # level feats tile
                pl.BlockSpec((P_ROWS, D), lambda i: (0, 0)),         # packed params
            ],
            out_specs=[
                pl.BlockSpec((TILE_N, n_imgs), lambda i: (i, 0)),    # scores_T2I tile
                pl.BlockSpec((n_imgs, TILE_N), lambda i: (0, i)),    # scores_I2T tile
            ],
        ),
        compiler_params=pltpu.CompilerParams(
            dimension_semantics=("parallel",),   # caption axis -> both TCs on v7x
        ),
    )(I, h, level_h_list, packed_params)
    return scores_T2I, scores_I2T


def glasses_reference(I, h, level_h_list, params):
    """Pure-JAX reference with identical semantics (for verification).

    level_h_list is layer-major [L, N, D]; the reference converts back to the
    PyTorch-style [N, L, D] ordering before applying the Lens.
    """
    hid = jnp.maximum(h @ params["w1"] + params["b1"], 0.0)
    neg_score = jax.nn.sigmoid(hid @ params["w2"] + params["b2"])    # [N, 1]
    neg_mask = (neg_score.squeeze(-1) > NEG_THR)[:, None]

    lvl = jnp.transpose(level_h_list, (1, 0, 2))                     # [N, L, D]
    logits = jnp.einsum("nld,do->nlo", lvl, params["wa"])[..., 0]    # [N, L]
    alpha = jax.nn.softmax(logits, axis=-1)
    pooled = jnp.einsum("nl,nld->nd", alpha, lvl)
    h_neg = pooled @ params["wp"] + params["bp"]

    def l2norm(x):
        return x / jnp.sqrt(jnp.sum(x * x, axis=-1, keepdims=True) + 1e-12)

    i_n, h_n, hn_n = l2norm(I), l2norm(h), l2norm(h_neg)
    sim_pos = h_n @ i_n.T
    sim_neg = hn_n @ i_n.T
    scores_T2I = LOGIT_SCALE * (sim_pos - jnp.where(neg_mask, NEG_WEIGHT * sim_neg, 0.0))
    return scores_T2I, scores_T2I.T


# ----------------------------- main ------------------------------------------
if __name__ == "__main__":
    key = jax.random.PRNGKey(0)
    k_i, k_h, k_lvl, k_w1, k_w2, k_wa, k_wp = jax.random.split(key, 7)

    I = jax.random.normal(k_i, (B, D), dtype=jnp.float32)
    h = jax.random.normal(k_h, (N, D), dtype=jnp.float32)
    # layer-major [L, N, D] -- the natural stacking of a list of per-layer
    # features; avoids any transpose on the hot path.
    level_h_list = jax.random.normal(k_lvl, (L, N, D), dtype=jnp.float32)

    params = {
        # NegationDetector (frozen)
        "w1": jax.random.normal(k_w1, (D, H), dtype=jnp.float32) * 0.1,
        "b1": jnp.zeros((1, H), dtype=jnp.float32),
        "w2": jax.random.normal(k_w2, (H, 1), dtype=jnp.float32) * 0.1,
        "b2": jnp.zeros((1, 1), dtype=jnp.float32),
        # CLIPGlassesLens
        "wa": jax.random.normal(k_wa, (D, 1), dtype=jnp.float32) * 0.1,
        "wp": jax.random.normal(k_wp, (D, D), dtype=jnp.float32) * 0.1,
        "bp": jnp.zeros((1, D), dtype=jnp.float32),
    }
    packed = jax.block_until_ready(pack_params(params))   # one-time, outside jit

    scores_T2I, scores_I2T = glasses_forward(I, h, level_h_list, packed)
    jax.block_until_ready((scores_T2I, scores_I2T))

    ref_T2I, ref_I2T = glasses_reference(I, h, level_h_list, params)
    np.testing.assert_allclose(np.asarray(scores_T2I), np.asarray(ref_T2I),
                               rtol=1e-4, atol=1e-4)
    np.testing.assert_allclose(np.asarray(scores_I2T), np.asarray(ref_I2T),
                               rtol=1e-4, atol=1e-4)
    assert scores_T2I.shape == (N, B) and scores_I2T.shape == (B, N)

    print("KERNEL_OK")
</pallas_src>

<mosaic_0001>
module attributes {stable_mosaic.version = 11 : i64} {
  func.func @glasses_kernel(%arg0: i32, %arg1: memref<2x32xf32, #tpu.memory_space<vmem>>, %arg2: memref<8x32xf32, #tpu.memory_space<vmem>>, %arg3: memref<4x8x32xf32, #tpu.memory_space<vmem>>, %arg4: memref<72x32xf32, #tpu.memory_space<vmem>>, %arg5: memref<8x2xf32, #tpu.memory_space<vmem>>, %arg6: memref<2x8xf32, #tpu.memory_space<vmem>>) attributes {dimension_semantics = [#tpu.dimension_semantics<parallel>], iteration_bounds = array<i64: 1>, scalar_prefetch = 0 : i64, scratch_operands = 0 : i64, tpu.core_type = #tpu.core_type<tc>, window_params = [{pipeline_mode = #tpu.pipeline_mode<synchronous>, transform_indices = @transform_0, window_bounds = array<i64: 2, 32>}, {transform_indices = @transform_1, window_bounds = array<i64: 8, 32>}, {transform_indices = @transform_2, window_bounds = array<i64: 4, 8, 32>}, {pipeline_mode = #tpu.pipeline_mode<synchronous>, transform_indices = @transform_3, window_bounds = array<i64: 72, 32>}, {transform_indices = @transform_4, window_bounds = array<i64: 8, 2>}, {transform_indices = @transform_5, window_bounds = array<i64: 2, 8>}]} {
    %c0 = arith.constant 0 : index
    %c0_0 = arith.constant 0 : index
    %0 = vector.load %arg2[%c0, %c0_0] : memref<8x32xf32, #tpu.memory_space<vmem>>, vector<8x32xf32>
    %c0_1 = arith.constant 0 : index
    %c0_2 = arith.constant 0 : index
    %c0_3 = arith.constant 0 : index
    %1 = vector.load %arg3[%c0_1, %c0_2, %c0_3] : memref<4x8x32xf32, #tpu.memory_space<vmem>>, vector<4x8x32xf32>
    %c0_4 = arith.constant 0 : index
    %c0_5 = arith.constant 0 : index
    %2 = vector.load %arg4[%c0_4, %c0_5] : memref<72x32xf32, #tpu.memory_space<vmem>>, vector<32x32xf32>
    %c32 = arith.constant 32 : index
    %c0_6 = arith.constant 0 : index
    %3 = vector.load %arg4[%c32, %c0_6] : memref<72x32xf32, #tpu.memory_space<vmem>>, vector<32x32xf32>
    %c64 = arith.constant 64 : index
    %c0_7 = arith.constant 0 : index
    %4 = vector.load %arg4[%c64, %c0_7] : memref<72x32xf32, #tpu.memory_space<vmem>>, vector<1x32xf32>
    %c65 = arith.constant 65 : index
    %c0_8 = arith.constant 0 : index
    %5 = vector.load %arg4[%c65, %c0_8] : memref<72x32xf32, #tpu.memory_space<vmem>>, vector<1x32xf32>
    %c66 = arith.constant 66 : index
    %c0_9 = arith.constant 0 : index
    %6 = vector.load %arg4[%c66, %c0_9] : memref<72x32xf32, #tpu.memory_space<vmem>>, vector<1x32xf32>
    %c67 = arith.constant 67 : index
    %c0_10 = arith.constant 0 : index
    %7 = vector.load %arg4[%c67, %c0_10] : memref<72x32xf32, #tpu.memory_space<vmem>>, vector<1x32xf32>
    %c68 = arith.constant 68 : index
    %c0_11 = arith.constant 0 : index
    %8 = vector.load %arg4[%c68, %c0_11] : memref<72x32xf32, #tpu.memory_space<vmem>>, vector<1x1xf32>
    %cst = arith.constant dense<0.000000e+00> : vector<8x32xf32>
    %9 = tpu.matmul %0, %2, %cst {dimension_numbers = #tpu.dot_dimension_numbers<[1], [0], [0], [1], [0, 0, 1, 1], [], []>} : vector<8x32xf32>, vector<32x32xf32>, vector<8x32xf32> -> vector<8x32xf32>
    %10 = vector.broadcast %4 : vector<1x32xf32> to vector<8x32xf32>
    %11 = arith.addf %9, %10 : vector<8x32xf32>
    %cst_12 = arith.constant 0.000000e+00 : f32
    %12 = vector.broadcast %cst_12 : f32 to vector<8x32xf32>
    %13 = arith.maximumf %11, %12 : vector<8x32xf32>
    %14 = vector.broadcast %5 : vector<1x32xf32> to vector<8x32xf32>
    %15 = arith.mulf %13, %14 : vector<8x32xf32>
    %cst_13 = arith.constant dense<0.000000e+00> : vector<8xf32>
    %16 = vector.multi_reduction <add>, %15, %cst_13 [1] : vector<8x32xf32> to vector<8xf32>
    %17 = vector.shape_cast %16 : vector<8xf32> to vector<8x1xf32>
    %18 = vector.broadcast %8 : vector<1x1xf32> to vector<8x1xf32>
    %19 = arith.addf %17, %18 : vector<8x1xf32>
    %cst_14 = arith.constant 0.000000e+00 : f32
    %20 = vector.broadcast %cst_14 : f32 to vector<8x1xf32>
    %21 = arith.cmpf ogt, %19, %20 : vector<8x1xf32>
    %22 = vector.shape_cast %6 : vector<1x32xf32> to vector<1x1x32xf32>
    %23 = vector.broadcast %22 : vector<1x1x32xf32> to vector<4x8x32xf32>
    %24 = arith.mulf %1, %23 : vector<4x8x32xf32>
    %cst_15 = arith.constant dense<0.000000e+00> : vector<4x8xf32>
    %25 = vector.multi_reduction <add>, %24, %cst_15 [2] : vector<4x8x32xf32> to vector<4x8xf32>
    %26 = vector.shape_cast %25 : vector<4x8xf32> to vector<4x8x1xf32>
    %cst_16 = arith.constant dense<0xFF800000> : vector<8x1xf32>
    %27 = vector.multi_reduction <maximumf>, %26, %cst_16 [0] : vector<4x8x1xf32> to vector<8x1xf32>
    %28 = vector.shape_cast %27 : vector<8x1xf32> to vector<1x8x1xf32>
    %29 = vector.broadcast %28 : vector<1x8x1xf32> to vector<4x8x1xf32>
    %30 = arith.subf %26, %29 : vector<4x8x1xf32>
    %31 = math.exp %30 : vector<4x8x1xf32>
    %cst_17 = arith.constant dense<0.000000e+00> : vector<8x1xf32>
    %32 = vector.multi_reduction <add>, %31, %cst_17 [0] : vector<4x8x1xf32> to vector<8x1xf32>
    %33 = vector.broadcast %31 : vector<4x8x1xf32> to vector<4x8x32xf32>
    %34 = arith.mulf %33, %1 : vector<4x8x32xf32>
    %cst_18 = arith.constant dense<0.000000e+00> : vector<8x32xf32>
    %35 = vector.multi_reduction <add>, %34, %cst_18 [0] : vector<4x8x32xf32> to vector<8x32xf32>
    %36 = tpu.reciprocal %32 : vector<8x1xf32> -> vector<8x1xf32>
    %37 = vector.broadcast %36 : vector<8x1xf32> to vector<8x32xf32>
    %38 = arith.mulf %35, %37 : vector<8x32xf32>
    %cst_19 = arith.constant dense<0.000000e+00> : vector<8x32xf32>
    %39 = tpu.matmul %38, %3, %cst_19 {dimension_numbers = #tpu.dot_dimension_numbers<[1], [0], [0], [1], [0, 0, 1, 1], [], []>} : vector<8x32xf32>, vector<32x32xf32>, vector<8x32xf32> -> vector<8x32xf32>
    %40 = vector.broadcast %7 : vector<1x32xf32> to vector<8x32xf32>
    %41 = arith.addf %39, %40 : vector<8x32xf32>
    %c0_20 = arith.constant 0 : index
    %c0_21 = arith.constant 0 : index
    %42 = vector.load %arg1[%c0_20, %c0_21] : memref<2x32xf32, #tpu.memory_space<vmem>>, vector<2x32xf32>
    %43 = arith.mulf %42, %42 : vector<2x32xf32>
    %cst_22 = arith.constant dense<0.000000e+00> : vector<2xf32>
    %44 = vector.multi_reduction <add>, %43, %cst_22 [1] : vector<2x32xf32> to vector<2xf32>
    %45 = vector.shape_cast %44 : vector<2xf32> to vector<2x1xf32>
    %cst_23 = arith.constant 9.99999996E-13 : f32
    %46 = vector.broadcast %cst_23 : f32 to vector<2x1xf32>
    %47 = arith.addf %45, %46 : vector<2x1xf32>
    %48 = math.rsqrt %47 : vector<2x1xf32>
    %49 = vector.broadcast %48 : vector<2x1xf32> to vector<2x32xf32>
    %50 = arith.mulf %42, %49 : vector<2x32xf32>
    %51 = arith.mulf %0, %0 : vector<8x32xf32>
    %cst_24 = arith.constant dense<0.000000e+00> : vector<8xf32>
    %52 = vector.multi_reduction <add>, %51, %cst_24 [1] : vector<8x32xf32> to vector<8xf32>
    %53 = vector.shape_cast %52 : vector<8xf32> to vector<8x1xf32>
    %cst_25 = arith.constant 9.99999996E-13 : f32
    %54 = vector.broadcast %cst_25 : f32 to vector<8x1xf32>
    %55 = arith.addf %53, %54 : vector<8x1xf32>
    %56 = math.rsqrt %55 : vector<8x1xf32>
    %57 = vector.broadcast %56 : vector<8x1xf32> to vector<8x32xf32>
    %58 = arith.mulf %0, %57 : vector<8x32xf32>
    %59 = arith.mulf %41, %41 : vector<8x32xf32>
    %cst_26 = arith.constant dense<0.000000e+00> : vector<8xf32>
    %60 = vector.multi_reduction <add>, %59, %cst_26 [1] : vector<8x32xf32> to vector<8xf32>
    %61 = vector.shape_cast %60 : vector<8xf32> to vector<8x1xf32>
    %cst_27 = arith.constant 9.99999996E-13 : f32
    %62 = vector.broadcast %cst_27 : f32 to vector<8x1xf32>
    %63 = arith.addf %61, %62 : vector<8x1xf32>
    %64 = math.rsqrt %63 : vector<8x1xf32>
    %65 = vector.broadcast %64 : vector<8x1xf32> to vector<8x32xf32>
    %66 = arith.mulf %41, %65 : vector<8x32xf32>
    %cst_28 = arith.constant 1.000000e+00 : f32
    %67 = vector.broadcast %cst_28 : f32 to vector<8x32xf32>
    %68 = arith.mulf %67, %66 : vector<8x32xf32>
    %cst_29 = arith.constant 0.000000e+00 : f32
    %69 = vector.shape_cast %21 : vector<8x1xi1> to vector<8x1xi1>
    %70 = vector.broadcast %69 : vector<8x1xi1> to vector<8x32xi1>
    %71 = vector.broadcast %cst_29 : f32 to vector<8x32xf32>
    %72 = arith.select %70, %68, %71 : vector<8x32xi1>, vector<8x32xf32>
    %73 = arith.subf %58, %72 : vector<8x32xf32>
    %74 = vector.shape_cast %73 : vector<8x32xf32> to vector<8x1x32xf32>
    %75 = vector.shape_cast %50 : vector<2x32xf32> to vector<1x2x32xf32>
    %76 = vector.broadcast %74 : vector<8x1x32xf32> to vector<8x2x32xf32>
    %77 = vector.broadcast %75 : vector<1x2x32xf32> to vector<8x2x32xf32>
    %78 = arith.mulf %76, %77 : vector<8x2x32xf32>
    %cst_30 = arith.constant dense<0.000000e+00> : vector<8x2xf32>
    %79 = vector.multi_reduction <add>, %78, %cst_30 [2] : vector<8x2x32xf32> to vector<8x2xf32>
    %cst_31 = arith.constant 1.000000e+02 : f32
    %80 = vector.broadcast %cst_31 : f32 to vector<8x2xf32>
    %81 = arith.mulf %80, %79 : vector<8x2xf32>
    %c0_32 = arith.constant 0 : index
    %c0_33 = arith.constant 0 : index
    %82 = vector.load %arg5[%c0_32, %c0_33] : memref<8x2xf32, #tpu.memory_space<vmem>>, vector<8x2xf32>
    tpu.vector_store %arg5[%c0_32, %c0_33], %81 {strides = array<i32>} : memref<8x2xf32, #tpu.memory_space<vmem>>, vector<8x2xf32>,
    %83 = vector.shape_cast %50 : vector<2x32xf32> to vector<2x1x32xf32>
    %84 = vector.shape_cast %73 : vector<8x32xf32> to vector<1x8x32xf32>
    %85 = vector.broadcast %83 : vector<2x1x32xf32> to vector<2x8x32xf32>
    %86 = vector.broadcast %84 : vector<1x8x32xf32> to vector<2x8x32xf32>
    %87 = arith.mulf %85, %86 : vector<2x8x32xf32>
    %cst_34 = arith.constant dense<0.000000e+00> : vector<2x8xf32>
    %88 = vector.multi_reduction <add>, %87, %cst_34 [2] : vector<2x8x32xf32> to vector<2x8xf32>
    %cst_35 = arith.constant 1.000000e+02 : f32
    %89 = vector.broadcast %cst_35 : f32 to vector<2x8xf32>
    %90 = arith.mulf %89, %88 : vector<2x8xf32>
    %c0_36 = arith.constant 0 : index
    %c0_37 = arith.constant 0 : index
    %91 = vector.load %arg6[%c0_36, %c0_37] : memref<2x8xf32, #tpu.memory_space<vmem>>, vector<2x8xf32>
    tpu.vector_store %arg6[%c0_36, %c0_37], %90 {strides = array<i32>} : memref<2x8xf32, #tpu.memory_space<vmem>>, vector<2x8xf32>,
    return
  }
  func.func @transform_0(%arg0: i32) -> (i32, i32) {
    %c0_i32 = arith.constant 0 : i32
    %c0_i32_0 = arith.constant 0 : i32
    %c0_i32_1 = arith.constant 0 : i32
    return %c0_i32, %c0_i32_0 : i32, i32
  }
  func.func @transform_1(%arg0: i32) -> (i32, i32) {
    %c0_i32 = arith.constant 0 : i32
    %c0_i32_0 = arith.constant 0 : i32
    return %arg0, %c0_i32 : i32, i32
  }
  func.func @transform_2(%arg0: i32) -> (i32, i32, i32) {
    %c0_i32 = arith.constant 0 : i32
    %c0_i32_0 = arith.constant 0 : i32
    %c0_i32_1 = arith.constant 0 : i32
    return %c0_i32, %arg0, %c0_i32_0 : i32, i32, i32
  }
  func.func @transform_3(%arg0: i32) -> (i32, i32) {
    %c0_i32 = arith.constant 0 : i32
    %c0_i32_0 = arith.constant 0 : i32
    %c0_i32_1 = arith.constant 0 : i32
    return %c0_i32, %c0_i32_0 : i32, i32
  }
  func.func @transform_4(%arg0: i32) -> (i32, i32) {
    %c0_i32 = arith.constant 0 : i32
    %c0_i32_0 = arith.constant 0 : i32
    return %arg0, %c0_i32 : i32, i32
  }
  func.func @transform_5(%arg0: i32) -> (i32, i32) {
    %c0_i32 = arith.constant 0 : i32
    %c0_i32_0 = arith.constant 0 : i32
    return %c0_i32, %arg0 : i32, i32
  }
}

</mosaic_0001>

<bundles_post_ra>
// kernel: glasses_forward.1
= control target key start
LH: loop header
LB: loop body
LE: loop exit
PB: predicated region body
PF: predicated region fallthrough
CT: control target
= control target key end

     0   :  { %vm39_vm0 = vcmask 261120   ;;  %s558_s0 = inlined_call_operand.vmem [shape: f32[2,32], index: 0, kind: input, shape index: {}]   ;;  %s559_s1 = inlined_call_operand.vmem [shape: f32[8,32], index: 1, kind: input, shape index: {}]   ;;  %s560_s2 = inlined_call_operand.vmem [shape: f32[4,8,32], index: 2, kind: input, shape index: {}]   ;;  %s561_s3 = inlined_call_operand.vmem [shape: f32[72,32], index: 3, kind: input, shape index: {}]   ;;  %s562_s4 = inlined_call_operand.vmem [shape: f32[8,2], index: 4, kind: output, shape index: {0}]   ;;  %s563_s5 = inlined_call_operand.hbm [shape: f32[2,8], index: 5, kind: output, shape index: {1}]  }
   0x1   :  { %v445_v0 = vld [vmem:[%s560_s2 + $0x10] sm:$0xff]  ;;  %v363_v1 = vld [vmem:[%s561_s3 + $0x42] ss:$0 sm:$0xff]  ;;  %v460_v5 = vld [vmem:[%s560_s2 + $0x18] sm:$0xff] }
   0x2   :  { %v453_v2 = vld [vmem:[%s560_s2] sm:$0xff]  ;;  %v75_v3 = vmul.f32 %v363_v1, %v445_v0  ;;  %v28_v6 = vld [vmem:[%s561_s3 + $0x18] sm:$0xff]  ;;  %v468_v7 = vld [vmem:[%s560_s2 + $0x8] sm:$0xff] }
   0x3   :  { %v73_v4 = vmul.f32 %v363_v1, %v453_v2  ;;  %55 = vmatpush.msra.mxu0 %v28_v6  ;;  %v27_v8 = vld [vmem:[%s561_s3 + $0x10] sm:$0xff]  ;;  %v26_v11 = vld [vmem:[%s561_s3 + $0x8] sm:$0xff] }
   0x4   :  { %v83_v9 = vsel %vm39_vm0, %v75_v3, 0.0 }
   0x5   :  { %v77_v10 = vsel %vm39_vm0, %v73_v4, 0.0  ;;  %84 = vadd.xlane.f32.xlu1 %v83_v9 }
   0x6   :  { %78 = vadd.xlane.f32.xlu0 %v77_v10 }
   0x7   :  { %11 = vsyncpa [#allocation3], 0  ;;  %v76_v12 = vmul.f32 %v363_v1, %v460_v5  ;;  %v74_v13 = vmul.f32 %v363_v1, %v468_v7  ;;  %56 = vmatpush.msra.mxu0 %v27_v8  ;;  %v25_v14 = vld [vmem:[%s561_s3] sm:$0xff]  ;;  %v32_v18 = vld [vmem:[%s561_s3 + $0x38] sm:$0xff]  ;;  %vm159_vm1 = vcmask 254976   ;;  %s346_s6 = sshll.u32 %s563_s5, 4  ;;  %s347_s6 = int_to_ptr.hbm [resolvable:$true] %s346_s6 }
   0x8   :  { %v486_v15 = vld [vmem:[%s559_s1] sm:$0xff]  ;;  %v31_v19 = vld [vmem:[%s561_s3 + $0x30] sm:$0xff]  ;;  %149 = vmatpush.msra.mxu1 %v32_v18  ;;  %v30_v22 = vld [vmem:[%s561_s3 + $0x28] sm:$0xff] }
   0x9   :  { %57 = vmatpush.msra.mxu0 %v26_v11  ;;  %v86_v16 = vsel %vm39_vm0, %v76_v12, 0.0  ;;  %v80_v17 = vsel %vm39_vm0, %v74_v13, 0.0  ;;  %v29_v23 = vld [vmem:[%s561_s3 + $0x20] sm:$0xff]  ;;  %v175_v39 = vmul.f32 %v486_v15, %v486_v15 }
   0xa   :  { %150 = vmatpush.msra.mxu1 %v31_v19  ;;  %v364_v37 = vld [vmem:[%s561_s3 + $0x40] ss:$0 sm:$0xff]  ;;  %v365_v43 = vld [vmem:[%s561_s3 + $0x41] ss:$0 sm:$0xff] }
   0xb   :  { %58 = vmatpush.msra.mxu0 %v25_v14  ;;  %v512_v40 = vld [vmem:[%s558_s0] sm:$0x3]  ;;  %v176_v44 = vsel %vm39_vm0, %v175_v39, 0.0 }
   0xc   :  { %357 = vmatmul.msk.f32.vlgmr.msra.gmra.mxu0 %vm39_vm0, %v486_v15  ;;  %151 = vmatpush.msra.mxu1 %v30_v22  ;;  %v158_v41 = vmul.f32 %v512_v40, %v512_v40 }
   0xd   :  { %87 = vadd.xlane.f32.xlu1 %v86_v16  ;;  %v366_v16 = vld [vmem:[%s561_s3 + $0x43] ss:$0 sm:$0xff] }
   0xe   :  { %81 = vadd.xlane.f32.xlu0 %v80_v17  ;;  %152 = vmatpush.msra.mxu1 %v29_v23  ;;  %v160_v45 = vsel %vm159_vm1, %v158_v41, 0.0 }
  0x15   :  { %161 = vadd.xlane.f32.xlu1 %v160_v45 }
  0x16   :  { %177 = vadd.xlane.f32.xlu0 %v176_v44 }
  0x78   :  { %v85_v20 = vpop.xlane.xlu1 %84 }
  0x79   :  { %v79_v21 = vpop.xlane.xlu0 %78 }
  0x80   :  { %v88_v24 = vpop.xlane.xlu1 %87 }
  0x81   :  { %v82_v25 = vpop.xlane.xlu0 %81  ;;  %v90_v26 = vmax.f32 %v85_v20, %v88_v24 }
  0x82   :  { %v89_v27 = vmax.f32 %v79_v21, %v82_v25 }
  0x84   :  { %v91_v28 = vmax.f32 %v89_v27, %v90_v26 }
  0x86   :  { %v92_v29 = vsub.f32 %v79_v21, %v91_v28  ;;  %v93_v30 = vsub.f32 %v82_v25, %v91_v28  ;;  %v94_v31 = vsub.f32 %v85_v20, %v91_v28  ;;  %v95_v32 = vsub.f32 %v88_v24, %v91_v28  ;;  %v367_v21 = vld [vmem:[%s561_s3 + $0x44] ss:$0 sm:$0xff]  ;;  %s411_s3 = smov [#allocation2]  }
  0x87   :  { %s344_s28 = sshll.u32 %s411_s3, 4  ;;  %s345_s28 = int_to_ptr.vmem [resolvable:$true] %s344_s28 }
  0x88   :  { %v96_v33 = vmul.f32 1.442695, %v92_v29  ;;  %v98_v34 = vmul.f32 1.442695, %v93_v30  ;;  %v100_v35 = vmul.f32 1.442695, %v94_v31  ;;  %v162_v27 = vpop.xlane.xlu1 %161 }
  0x89   :  { %v102_v36 = vmul.f32 1.442695, %v95_v32  ;;  %v60_v38 = vpop.f32.mrf.mxu0  ;;  %v178_v25 = vpop.xlane.xlu0 %177  ;;  %v163_v28 = vadd.f32 1e-12, %v162_v27 }
  0x8a   :  { %368 = vpow2.f32 %v96_v33  ;;  %v61_v42 = vadd.f32 %v364_v37, %v60_v38  ;;  %v179_v26 = vadd.f32 1e-12, %v178_v25 }
  0x8b   :  { %370 = vpow2.f32 %v98_v34  ;;  %vm170_vm9 = vweird.f32 %v163_v28 }
  0x8c   :  { %372 = vpow2.f32 %v100_v35  ;;  %v63_v46 = vmax.f32 %v61_v42, 0.0  ;;  %vm186_vm7 = vweird.f32 %v179_v26 }
  0x8d   :  { %374 = vpow2.f32 %v102_v36 }
  0x8e   :  { %v65_v49 = vmul.f32 %v365_v43, %v63_v46 }
  0x90   :  { %v369_v47 = vpop.eup %368  ;;  %v66_v52 = vsel %vm39_vm0, %v65_v49, 0.0 }
  0x91   :  { %v371_v48 = vpop.eup %370  ;;  %67 = vadd.xlane.f32.xlu2 %v66_v52  ;;  %v107_v57 = vmul.f32 %v369_v47, %v453_v2 }
  0x92   :  { %v104_v50 = vadd.f32 %v371_v48, %v369_v47  ;;  %v373_v51 = vpop.eup %372  ;;  %v108_v56 = vmul.f32 %v371_v48, %v468_v7 }
  0x93   :  { %v375_v54 = vpop.eup %374  ;;  %v111_v58 = vsel %vm39_vm0, %v107_v57, 0.0  ;;  %v109_v61 = vmul.f32 %v373_v51, %v445_v0 }
  0x94   :  { %v105_v53 = vadd.f32 %v373_v51, %v104_v50  ;;  %v112_v59 = vsel %vm39_vm0, %v108_v56, 0.0  ;;  %v110_v3 = vmul.f32 %v375_v54, %v460_v5  ;;  %v410_v5 = vmov 0  }
  0x95   :  { %v113_v62 = vadd.f32 %v112_v59, %v111_v58  ;;  %v114_v4 = vsel %vm39_vm0, %v109_v61, 0.0  ;;  %361 = vset.pattern.permute.xlu2 %v410_v5  ;;  %362 = vset.pattern.permute.xlu0 %v410_v5 }
  0x96   :  { %v106_v55 = vadd.f32 %v375_v54, %v105_v53  ;;  %v116_v10 = vsel %vm39_vm0, %v110_v3, 0.0 }
  0x97   :  { %v115_v8 = vadd.f32 %v114_v4, %v113_v62 }
  0x98   :  { %376 = vrcp.f32 %v106_v55  ;;  %v129_v6 = vand.u32 2147483648, %v106_v55  ;;  %v127_v9 = vand.u32 2147483647, %v106_v55  ;;  %vm123_vm3 = vweird.f32 %v106_v55 }
  0x99   :  { %v117_v12 = vadd.f32 %v116_v10, %v115_v8  ;;  %378 = vrsqrt.f32 %v179_v26 }
  0x9a   :  { %v130_v11 = vor.u32 1.1754944e-38, %v129_v6  ;;  %vm128_vm5 = vcmp.eq.f32.partialorder %v127_v9, 8.507059e+37  ;;  %380 = vrsqrt.f32 %v163_v28 }
  0x9e   :  { %v377_v60 = vpop.eup %376 }
  0x9f   :  { %v119_v63 = vmul.f32 %v377_v60, %v106_v55  ;;  %vm124_vm2 = vweird.f32 %v377_v60  ;;  %v379_v29 = vpop.eup %378 }
  0xa0   :  { %vm125_vm4 = vmor %vm123_vm3, %vm124_vm2  ;;  %v381_v30 = vpop.eup %380  ;;  %v181_v31 = vmul.f32 %v379_v29, %v179_v26  ;;  %vm187_vm8 = vweird.f32 %v379_v29  ;;  %vm298_vm3 = vcmask 1042434  }
  0xa1   :  { %v120_v1 = vsub.f32 1.0, %v119_v63  ;;  %v165_v34 = vmul.f32 %v381_v30, %v163_v28  ;;  %vm171_vm10 = vweird.f32 %v381_v30  ;;  %vm188_vm11 = vmor %vm186_vm7, %vm187_vm8  ;;  %vm306_vm7 = vcmask 1046534  }
  0xa2   :  { %v182_v35 = vmul.f32 %v379_v29, %v181_v31  ;;  %vm172_vm13 = vmor %vm170_vm9, %vm171_vm10  ;;  %vm308_vm8 = vcmask 1047559   ;;  %vm311_vm9 = vcmask 15360  }
  0xa3   :  { %v121_v7 = vmul.f32 %v377_v60, %v120_v1  ;;  %v166_v36 = vmul.f32 %v381_v30, %v165_v34 }
  0xa4   :  { %v183_v37 = vmul.f32 0.5, %v182_v35 }
  0xa5   :  { %v122_v2 = vadd.f32 %v377_v60, %v121_v7  ;;  %v167_v39 = vmul.f32 0.5, %v166_v36  ;;  %v286_v36 = vlaneseq }
  0xa6   :  { %v184_v42 = vsub.f32 1.5, %v183_v37 }
  0xa7   :  { %v126_v0 = vsel %vm125_vm4, %v377_v60, %v122_v2  ;;  %v168_v44 = vsub.f32 1.5, %v167_v39  ;;  %vm302_vm4 = vcmask 1044484  }
  0xa8   :  { %v131_v13 = vsel %vm128_vm5, %v130_v11, %v126_v0  ;;  %v185_v46 = vmul.f32 %v379_v29, %v184_v42  ;;  %v287_v42 = vand.u32 127, %v286_v36  ;;  %vm335_vm5 = vcmask 58368  }
  0xa9   :  { %v132_v14 = vmul.f32 %v131_v13, %v117_v12  ;;  %v169_v49 = vmul.f32 %v381_v30, %v168_v44 }
  0xaa   :  { %v189_v51 = vsel %vm188_vm11, %v379_v29, %v185_v46 }
  0xab   :  { %358 = vmatmul.msk.f32.vlgmr.msra.gmra.mxu1 %vm39_vm0, %v132_v14  ;;  %v173_v54 = vsel %vm172_vm13, %v381_v30, %v169_v49  ;;  %v190_v55 = vmul.f32 %v189_v51, %v486_v15 }
  0xac   :  { %v174_v58 = vmul.f32 %v173_v54, %v512_v40 }
 0x104   :  { %v68_v22 = vpop.xlane.xlu2 %67 }
 0x105   :  { %v70_v23 = vadd.f32 %v367_v21, %v68_v22  ;;  %v315_v22 = vperm.slane %v174_v58, 0 }
 0x107   :  { %vm71_vm6 = vcmp.gt.f32.partialorder %v70_v23, 0.0 }
 0x108   :  { %v207_v24 = vsel %vm71_vm6, 1, %v410_v5  ;;  %vm304_vm6 = vcmask 1045509  }
 0x128   :  { %v154_v17 = vpop.f32.mrf.mxu1 }
 0x129   :  { %v155_v18 = vadd.f32 %v366_v16, %v154_v17 }
 0x12b   :  { %v191_v19 = vmul.f32 %v155_v18, %v155_v18 }
 0x12d   :  { %v192_v20 = vsel %vm39_vm0, %v191_v19, 0.0 }
 0x12e   :  { %193 = vadd.xlane.f32.xlu2 %v192_v20  ;;  %v314_v20 = vrot.slane %v174_v58, 1 }
 0x146   :  { %209 = vperm.xlu2 %361, %v207_v24   ;;  %v316_v24 = vperm.slane %v314_v20, 0 }
 0x1a1   :  { %v194_v32 = vpop.xlane.xlu2 %193 }
 0x1a2   :  { %v195_v33 = vadd.f32 1e-12, %v194_v32 }
 0x1a4   :  { %382 = vrsqrt.f32 %v195_v33  ;;  %vm202_vm14 = vweird.f32 %v195_v33 }
 0x1a9   :  { %v210_v48 = vpop.permute.xlu2 %209 }
 0x1aa   :  { %v383_v38 = vpop.eup %382  ;;  %vm211_vm2 = vcmp.eq.s32.totalorder %v210_v48, 1 }
 0x1ab   :  { %v197_v41 = vmul.f32 %v383_v38, %v195_v33  ;;  %vm203_vm12 = vweird.f32 %v383_v38 }
 0x1ac   :  { %vm204_vm15 = vmor %vm202_vm14, %vm203_vm12 }
 0x1ad   :  { %v198_v43 = vmul.f32 %v383_v38, %v197_v41 }
 0x1af   :  { %v199_v45 = vmul.f32 0.5, %v198_v43 }
 0x1b1   :  { %v200_v47 = vsub.f32 1.5, %v199_v45 }
 0x1b3   :  { %v201_v50 = vmul.f32 %v383_v38, %v200_v47 }
 0x1b5   :  { %v205_v52 = vsel %vm204_vm15, %v383_v38, %v201_v50 }
 0x1b6   :  { %v206_v53 = vmul.f32 %v205_v52, %v155_v18 }
 0x1b8   :  { %v212_v56 = vsel %vm211_vm2, %v206_v53, 0.0 }
 0x1b9   :  { %v213_v57 = vsub.f32 %v190_v55, %v212_v56 }
 0x1bb   :  { %v222_v59 = vperm.slane %v213_v57, 0  ;;  %v220_v60 = vrot.slane %v213_v57, 6  ;;  %v215_v61 = vrot.slane %v213_v57, 1  ;;  %v216_v62 = vrot.slane %v213_v57, 2 }
 0x1bc   :  { %v217_v4 = vrot.slane %v213_v57, 3  ;;  %v218_v11 = vrot.slane %v213_v57, 4  ;;  %v219_v0 = vrot.slane %v213_v57, 5  ;;  %v319_v23 = vmul.f32 %v315_v22, %v213_v57 }
 0x1bd   :  { %v238_v63 = vmul.f32 %v222_v59, %v174_v58  ;;  %v228_v1 = vperm.slane %v220_v60, 0  ;;  %v223_v3 = vperm.slane %v215_v61, 0  ;;  %v224_v9 = vperm.slane %v216_v62, 0 }
 0x1be   :  { %v225_v10 = vperm.slane %v217_v4, 0  ;;  %v226_v14 = vperm.slane %v218_v11, 0  ;;  %v227_v16 = vperm.slane %v219_v0, 0  ;;  %v221_v25 = vrot.slane %v213_v57, 7 }
 0x1bf   :  { %v246_v6 = vsel %vm159_vm1, %v238_v63, 0.0  ;;  %v244_v8 = vmul.f32 %v228_v1, %v174_v58  ;;  %v239_v7 = vmul.f32 %v223_v3, %v174_v58  ;;  %v240_v40 = vmul.f32 %v224_v9, %v174_v58 }
 0x1c0   :  { %247 = vadd.xlane.f32.xlu0 %v246_v6  ;;  %v241_v12 = vmul.f32 %v225_v10, %v174_v58  ;;  %v242_v17 = vmul.f32 %v226_v14, %v174_v58  ;;  %v243_v18 = vmul.f32 %v227_v16, %v174_v58  ;;  %v320_v26 = vmul.f32 %v316_v24, %v213_v57 }
 0x1c1   :  { %v264_v15 = vsel %vm159_vm1, %v244_v8, 0.0  ;;  %v249_v2 = vsel %vm159_vm1, %v239_v7, 0.0  ;;  %v252_v13 = vsel %vm159_vm1, %v240_v40, 0.0  ;;  %v321_v27 = vsel %vm39_vm0, %v319_v23, 0.0 }
 0x1c2   :  { %265 = vadd.xlane.f32.xlu2 %v264_v15  ;;  %250 = vadd.xlane.f32.xlu1 %v249_v2  ;;  %v255_v5 = vsel %vm159_vm1, %v241_v12, 0.0  ;;  %v258_v19 = vsel %vm159_vm1, %v242_v17, 0.0  ;;  %v261_v21 = vsel %vm159_vm1, %v243_v18, 0.0  ;;  %v229_v28 = vperm.slane %v221_v25, 0 }
 0x1c3   :  { %v324_v29 = vsel %vm39_vm0, %v320_v26, 0.0  ;;  %vm296_vm0 = vcmask 1041409  }
 0x1c4   :  { %v245_v30 = vmul.f32 %v229_v28, %v174_v58 }
 0x1c6   :  { %v267_v31 = vsel %vm159_vm1, %v245_v30, 0.0  ;;  %vm300_vm1 = vcmask 1043459  }
 0x1c8   :  { %253 = vadd.xlane.f32.xlu0 %v252_v13 }
 0x1ca   :  { %256 = vadd.xlane.f32.xlu1 %v255_v5 }
 0x1d0   :  { %259 = vadd.xlane.f32.xlu0 %v258_v19 }
 0x1d2   :  { %262 = vadd.xlane.f32.xlu1 %v261_v21 }
 0x1d8   :  { %322 = vadd.xlane.f32.xlu0 %v321_v27 }
 0x1da   :  { %325 = vadd.xlane.f32.xlu1 %v324_v29 }
 0x1e0   :  { %268 = vadd.xlane.f32.xlu0 %v267_v31 }
 0x233   :  { %v248_v32 = vpop.xlane.xlu0 %247 }
 0x234   :  { %v270_v43 = vmul.f32 100.0, %v248_v32 }
 0x235   :  { %v251_v33 = vpop.xlane.xlu1 %250  ;;  %v266_v57 = vpop.xlane.xlu2 %265 }
 0x236   :  { %v271_v38 = vmul.f32 100.0, %v251_v33  ;;  %v288_v48 = vperm.slane %v270_v43, %v287_v42  ;;  %v276_v63 = vmul.f32 100.0, %v266_v57 }
 0x238   :  { %v289_v44 = vperm.slane %v271_v38, %v287_v42  ;;  %v294_v7 = vperm.slane %v276_v63, %v287_v42 }
 0x23a   :  { %v297_v53 = vsel %vm296_vm0, %v289_v44, %v288_v48 }
 0x23b   :  { %v254_v34 = vpop.xlane.xlu0 %253 }
 0x23c   :  { %v272_v39 = vmul.f32 100.0, %v254_v34 }
 0x23d   :  { %v257_v35 = vpop.xlane.xlu1 %256 }
 0x23e   :  { %v273_v45 = vmul.f32 100.0, %v257_v35  ;;  %v290_v46 = vperm.slane %v272_v39, %v287_v42 }
 0x240   :  { %v291_v50 = vperm.slane %v273_v45, %v287_v42  ;;  %v299_v56 = vsel %vm298_vm3, %v290_v46, %v297_v53 }
 0x242   :  { %v301_v62 = vsel %vm300_vm1, %v291_v50, %v299_v56 }
 0x243   :  { %v260_v37 = vpop.xlane.xlu0 %259 }
 0x244   :  { %v274_v47 = vmul.f32 100.0, %v260_v37 }
 0x245   :  { %v263_v41 = vpop.xlane.xlu1 %262 }
 0x246   :  { %v275_v51 = vmul.f32 100.0, %v263_v41  ;;  %v292_v54 = vperm.slane %v274_v47, %v287_v42 }
 0x248   :  { %v293_v59 = vperm.slane %v275_v51, %v287_v42  ;;  %v303_v1 = vsel %vm302_vm4, %v292_v54, %v301_v62 }
 0x24a   :  { %v305_v8 = vsel %vm304_vm6, %v293_v59, %v303_v1 }
 0x24b   :  { %v323_v49 = vpop.xlane.xlu0 %322  ;;  %v307_v15 = vsel %vm306_vm7, %v294_v7, %v305_v8 }
 0x24c   :  { %v327_v52 = vmul.f32 100.0, %v323_v49 }
 0x24d   :  { %v326_v55 = vpop.xlane.xlu1 %325 }
 0x24e   :  { %v328_v58 = vmul.f32 100.0, %v326_v55  ;;  %v331_v60 = vperm.slane %v327_v52, %v287_v42 }
 0x250   :  { %v332_v61 = vperm.slane %v328_v58, %v287_v42 }
 0x252   :  { %v333_v3 = vsel %vm296_vm0, %v332_v61, %v331_v60 }
 0x253   :  { %v269_v4 = vpop.xlane.xlu0 %268  ;;  %336 = vst.msk [vmem:[#allocation2] sm:$0x3] %vm335_vm5, %v333_v3 }
 0x254   :  { %v277_v6 = vmul.f32 100.0, %v269_v4  ;;  %349 = dma.vmem_to_hbm [thread:$0]  %s345_s28, 32, %s347_s6, [#allocation3]  }
 0x256   :  { %v295_v9 = vperm.slane %v277_v6, %v287_v42 }
 0x258   :  { %v309_v2 = vsel %vm308_vm8, %v295_v9, %v307_v15 }
 0x259   :  { %312 = vst.msk [vmem:[%s562_s4] sm:$0xff] %vm311_vm9, %v309_v2 }
 0x25a   :  { %408 = dma.done.wait [#allocation3], 32  }
 0x25b   :  { %409 = vsyncadd [#allocation3], 4294967264 }
 0x25c   :  { %356 = vsyncpa [#allocation3], 1 }

</bundles_post_ra>
